<compile_context>
chip_gen: v6e
topology: v6e:2x2x1
jax: 0.10.0
libtpu: 0.0.40
codegen_flags: <defaults>
</compile_context>

<pallas_src>
import functools
import math

import jax
import jax.numpy as jnp
from jax.experimental import pallas as pl
from jax.experimental.pallas import tpu as pltpu


def _full_spec(shape):
    nd = len(shape)
    return pl.BlockSpec(shape, lambda *_: (0,) * nd)


# -------------------------- in-kernel LayerNorm (f32) --------------------------
def _ln(x, g, b, eps):
    mu = jnp.mean(x, axis=-1, keepdims=True)
    xc = x - mu
    var = jnp.mean(xc * xc, axis=-1, keepdims=True)
    return xc * jax.lax.rsqrt(var + eps) * g + b


# --------- fused patch embed + pos-embed + CLS token + row padding -------------
def _embed_kernel(p_ref, w_ref, b_ref, pos_ref, cls_ref, o_ref):
    # p_ref: (1, Np, Kpad) bf16   w_ref: (Kpad, D) bf16
    # b_ref: (1, D) f32           pos_ref: (Np, D) f32   cls_ref: (1, D) f32
    # o_ref: (1, Npad, D) f32
    npatch = pos_ref.shape[0]
    y = jnp.dot(p_ref[0], w_ref[...], preferred_element_type=jnp.float32)   # (Np, D)
    o_ref[0, :, :] = jnp.zeros_like(o_ref[0])            # zero padded token rows
    o_ref[0, 0:1, :] = cls_ref[...]                      # CLS token (+ its pos-embed)
    o_ref[0, 1:1 + npatch, :] = y + b_ref[...] + pos_ref[...]


def embed_tokens(patches, patch_w, patch_b, pos_patch, cls_pos, n_pad):
    B, Np, Kpad = patches.shape
    _, D = patch_w.shape
    return pl.pallas_call(
        _embed_kernel,
        out_shape=jax.ShapeDtypeStruct((B, n_pad, D), jnp.float32),
        grid=(B,),
        in_specs=[pl.BlockSpec((1, Np, Kpad), lambda b: (b, 0, 0)),
                  pl.BlockSpec((Kpad, D), lambda b: (0, 0)),
                  pl.BlockSpec((1, D), lambda b: (0, 0)),
                  pl.BlockSpec((Np, D), lambda b: (0, 0)),   # pos-embed DMA'd once
                  pl.BlockSpec((1, D), lambda b: (0, 0))],
        out_specs=pl.BlockSpec((1, n_pad, D), lambda b: (b, 0, 0)),
        compiler_params=pltpu.CompilerParams(dimension_semantics=("parallel",)),
    )(patches, patch_w, patch_b, pos_patch, cls_pos)


# -------------- fused transformer stack (grid = (batch, depth)) ----------------
def _block_kernel(x_ref,
                  ln1_g_ref, ln1_b_ref, qkv_w_ref, qkv_b_ref,
                  proj_w_ref, proj_b_ref, ls1_ref,
                  ln2_g_ref, ln2_b_ref, fc1_w_ref, fc1_b_ref,
                  fc2_w_ref, fc2_b_ref, ls2_ref,
                  o_ref, xres, attn_buf, *, num_heads, n_valid, eps):
    layer = pl.program_id(1)
    depth = pl.num_programs(1)

    # Load the activation into the resident VMEM scratch at the first layer.
    @pl.when(layer == 0)
    def _():
        xres[...] = x_ref[0]

    x = xres[...]                                          # (Npad, D) f32
    Npad, D = x.shape
    dh = D // num_heads

    # ---- attention branch: LN1 -> QKV -> per-head softmax(QK^T)V -> proj ----
    h = _ln(x, ln1_g_ref[0], ln1_b_ref[0], eps)
    qkv = jnp.dot(h.astype(jnp.bfloat16), qkv_w_ref[0],
                  preferred_element_type=jnp.float32) + qkv_b_ref[0]   # (Npad, 3D)
    # NOTE: 1/sqrt(dh) was folded into the q columns of qkv_w / qkv_b at prep time.

    # Mask padded key columns so padded tokens never contaminate real tokens.
    key_mask = jax.lax.broadcasted_iota(jnp.int32, (Npad, Npad), 1) < n_valid

    # Static head loop (num_heads=6, scores are only (8,8) here so live ranges
    # are tiny).  TODO(synk): switch to lax.fori_loop + pl.ds head slices for
    # realistic N (257) to bound live ranges / avoid spills.
    for hh in range(num_heads):
        q_h = qkv[:, hh * dh:(hh + 1) * dh]
        k_h = qkv[:, D + hh * dh:D + (hh + 1) * dh]
        v_h = qkv[:, 2 * D + hh * dh:2 * D + (hh + 1) * dh]
        s = jax.lax.dot_general(q_h.astype(jnp.bfloat16), k_h.astype(jnp.bfloat16),
                                (((1,), (1,)), ((), ())),
                                preferred_element_type=jnp.float32)     # (Npad, Npad)
        s = jnp.where(key_mask, s, -1e30)
        m = jnp.max(s, axis=-1, keepdims=True)
        p = jnp.exp(s - m)
        p = p * pl.reciprocal(jnp.sum(p, axis=-1, keepdims=True), approx=True)
        o_h = jnp.dot(p.astype(jnp.bfloat16), v_h.astype(jnp.bfloat16),
                      preferred_element_type=jnp.float32)               # (Npad, dh)
        attn_buf[:, hh * dh:(hh + 1) * dh] = o_h          # concat heads in VMEM

    # ONE full-K projection matmul (K = D) instead of num_heads K=dh matmuls.
    proj = jnp.dot(attn_buf[...].astype(jnp.bfloat16), proj_w_ref[0],
                   preferred_element_type=jnp.float32) + proj_b_ref[0]
    x = x + ls1_ref[0] * proj                              # residual + LayerScale 1

    # ---- MLP branch: LN2 -> fc1 + GELU -> fc2 ----
    h2 = _ln(x, ln2_g_ref[0], ln2_b_ref[0], eps)
    f = jnp.dot(h2.astype(jnp.bfloat16), fc1_w_ref[0],
                preferred_element_type=jnp.float32) + fc1_b_ref[0]
    # TODO(synk): PyTorch nn.GELU defaults to the exact erf form; tanh approx used here.
    f = jax.nn.gelu(f, approximate=True)
    f = jnp.dot(f.astype(jnp.bfloat16), fc2_w_ref[0],
                preferred_element_type=jnp.float32) + fc2_b_ref[0]
    x = x + ls2_ref[0] * f                                 # residual + LayerScale 2

    xres[...] = x

    # Write the output block (resident across the depth axis) only once.
    @pl.when(layer == depth - 1)
    def _():
        o_ref[0] = x.astype(o_ref.dtype)


def transformer_stack(xseq, bw, *, num_heads, n_valid, depth, eps=1e-6):
    B, Npad, D = xseq.shape
    H = bw["fc1_w"].shape[-1]
    vec = lambda d: pl.BlockSpec((1, 1, d), lambda b, l: (l, 0, 0))
    mat = lambda r, c: pl.BlockSpec((1, r, c), lambda b, l: (l, 0, 0))
    xspec = pl.BlockSpec((1, Npad, D), lambda b, l: (b, 0, 0))  # resident over depth
    return pl.pallas_call(
        functools.partial(_block_kernel, num_heads=num_heads,
                          n_valid=n_valid, eps=eps),
        out_shape=jax.ShapeDtypeStruct((B, Npad, D), jnp.float32),
        grid=(B, depth),
        in_specs=[xspec,
                  vec(D), vec(D), mat(D, 3 * D), vec(3 * D),
                  mat(D, D), vec(D), vec(D),
                  vec(D), vec(D), mat(D, H), vec(H),
                  mat(H, D), vec(D), vec(D)],
        out_specs=xspec,
        scratch_shapes=[pltpu.VMEM((Npad, D), jnp.float32),   # resident activation
                        pltpu.VMEM((Npad, D), jnp.float32)],  # concatenated heads
        compiler_params=pltpu.CompilerParams(
            # batch outer "parallel" (>=2 steps -> both v7x TCs busy), depth inner.
            dimension_semantics=("parallel", "arbitrary"),
            # ~3.5 MB bf16 weights/layer double-buffered + tiny activation -> ~8 MiB
            # actually used; 24 MiB keeps headroom under v7x's 64 MiB physical VMEM.
            vmem_limit_bytes=24 * 1024 * 1024),
    )(xseq, bw["ln1_g"], bw["ln1_b"], bw["qkv_w"], bw["qkv_b"],
      bw["proj_w"], bw["proj_b"], bw["ls1"],
      bw["ln2_g"], bw["ln2_b"], bw["fc1_w"], bw["fc1_b"],
      bw["fc2_w"], bw["fc2_b"], bw["ls2"])


# --------------- fused final LayerNorm (CLS token) + Linear classifier ---------
def _head_kernel(cls_ref, g_ref, b_ref, w_ref, hb_ref, o_ref, *, eps):
    h = _ln(cls_ref[...], g_ref[...], b_ref[...], eps)
    y = jnp.dot(h.astype(jnp.bfloat16), w_ref[...], preferred_element_type=jnp.float32)
    o_ref[...] = (y + hb_ref[...]).astype(o_ref.dtype)


def classifier_head(cls_feat, g, b, w_bf16, hb):
    B, D = cls_feat.shape
    _, Nc = w_bf16.shape
    return pl.pallas_call(
        functools.partial(_head_kernel, eps=1e-6),
        out_shape=jax.ShapeDtypeStruct((B, Nc), jnp.float32),
        grid=(1,),
        in_specs=[_full_spec((B, D)), _full_spec((1, D)), _full_spec((1, D)),
                  _full_spec((D, Nc)), _full_spec((1, Nc))],
        out_specs=_full_spec((B, Nc)),
        compiler_params=pltpu.CompilerParams(dimension_semantics=("arbitrary",)),
    )(cls_feat, g, b, w_bf16, hb)


# ------------------------------ parameter setup -------------------------------
def init_params(key, *, img_size, patch, in_chans, dim, depth, num_heads,
                mlp_ratio, num_classes):
    n_patches = (img_size // patch) ** 2
    n_tokens = n_patches + 1
    hidden = dim * mlp_ratio
    patch_dim = in_chans * patch * patch

    def dense(k, shape, scale=0.02):
        return (scale * jax.random.normal(k, shape)).astype(jnp.float32)

    keys = jax.random.split(key, 8 + depth)
    params = {
        "patch_w": dense(keys[0], (patch_dim, dim)),          # conv-as-matmul weight
        "patch_b": jnp.zeros((dim,), jnp.float32),
        "cls_token": dense(keys[1], (1, 1, dim)),
        "pos_embed": dense(keys[2], (1, n_tokens, dim)),
        "norm_g": jnp.ones((dim,), jnp.float32),
        "norm_b": jnp.zeros((dim,), jnp.float32),
        "head_w": dense(keys[3], (dim, num_classes)),          # nn.Linear(dim, num_classes)
        "head_b": jnp.zeros((num_classes,), jnp.float32),
        "blocks": [],
    }
    for li in range(depth):
        bk = jax.random.split(keys[8 + li], 4)
        params["blocks"].append({
            "ln1_g": jnp.ones((dim,), jnp.float32),
            "ln1_b": jnp.zeros((dim,), jnp.float32),
            "qkv_w": dense(bk[0], (dim, 3 * dim)),
            "qkv_b": jnp.zeros((3 * dim,), jnp.float32),
            "proj_w": dense(bk[1], (dim, dim)),
            "proj_b": jnp.zeros((dim,), jnp.float32),
            "ls1": jnp.full((dim,), 0.1, jnp.float32),
            "ln2_g": jnp.ones((dim,), jnp.float32),
            "ln2_b": jnp.zeros((dim,), jnp.float32),
            "fc1_w": dense(bk[2], (dim, hidden)),
            "fc1_b": jnp.zeros((hidden,), jnp.float32),
            "fc2_w": dense(bk[3], (hidden, dim)),
            "fc2_b": jnp.zeros((dim,), jnp.float32),
            "ls2": jnp.full((dim,), 0.1, jnp.float32),
        })
    return params


def prepare_params(params, cfg):
    """One-time weight prep (hoisted out of the forward pass):
       bf16 MXU weights, 1/sqrt(dh) folded into q columns, depth-stacked per-layer
       tensors, padded patch-embed contraction dim, padded classifier lanes."""
    D = cfg["dim"]
    nh = cfg["num_heads"]
    dh = D // nh
    P, C = cfg["patch"], cfg["in_chans"]
    nc = cfg["num_classes"]
    scale = 1.0 / math.sqrt(dh)

    Kp = C * P * P
    Kpad = ((Kp + 255) // 256) * 256            # 588 -> 768 (3 full 256-deep MXU passes)
    NCpad = ((nc + 127) // 128) * 128

    blks = params["blocks"]

    def stack(name, fn):
        return jnp.stack([fn(lp[name]) for lp in blks], axis=0)

    blocks = dict(
        ln1_g=stack("ln1_g", lambda a: a.reshape(1, D)),
        ln1_b=stack("ln1_b", lambda a: a.reshape(1, D)),
        qkv_w=jnp.stack([lp["qkv_w"].at[:, :D].multiply(scale).astype(jnp.bfloat16)
                         for lp in blks], axis=0),
        qkv_b=jnp.stack([lp["qkv_b"].at[:D].multiply(scale).reshape(1, 3 * D)
                         for lp in blks], axis=0),
        proj_w=stack("proj_w", lambda a: a.astype(jnp.bfloat16)),
        proj_b=stack("proj_b", lambda a: a.reshape(1, D)),
        ls1=stack("ls1", lambda a: a.reshape(1, D)),
        ln2_g=stack("ln2_g", lambda a: a.reshape(1, D)),
        ln2_b=stack("ln2_b", lambda a: a.reshape(1, D)),
        fc1_w=stack("fc1_w", lambda a: a.astype(jnp.bfloat16)),
        fc1_b=stack("fc1_b", lambda a: a.reshape(1, -1)),
        fc2_w=stack("fc2_w", lambda a: a.astype(jnp.bfloat16)),
        fc2_b=stack("fc2_b", lambda a: a.reshape(1, D)),
        ls2=stack("ls2", lambda a: a.reshape(1, D)),
    )
    # TODO(synk): on v7x the fc1/fc2/proj weights could be fp8 for 2x MXU throughput;
    # kept bf16 here (portable across v5e/v6e, no accuracy re-check needed).

    return dict(
        blocks=blocks,
        patch_w=jnp.pad(params["patch_w"], ((0, Kpad - Kp), (0, 0))).astype(jnp.bfloat16),
        patch_b=params["patch_b"].reshape(1, D),
        pos_patch=params["pos_embed"][0, 1:, :],                          # (Np, D)
        cls_pos=params["cls_token"][0] + params["pos_embed"][0, 0:1, :],  # (1, D)
        norm_g=params["norm_g"].reshape(1, D),
        norm_b=params["norm_b"].reshape(1, D),
        head_w=jnp.pad(params["head_w"], ((0, 0), (0, NCpad - nc))).astype(jnp.bfloat16),
        head_b=jnp.pad(params["head_b"], (0, NCpad - nc)).reshape(1, NCpad),
        Kpad=Kpad,
        NCpad=NCpad,
    )


# --------------------------------- forward pass --------------------------------
def dinov2_classifier_forward(x, pp, cfg):
    B, C, Hi, Wi = x.shape
    P, D, nh = cfg["patch"], cfg["dim"], cfg["num_heads"]
    nc = cfg["num_classes"]
    depth = cfg["depth"]
    gh, gw = Hi // P, Wi // P
    Np = gh * gw
    N = Np + 1                                   # +CLS
    Npad = ((N + 7) // 8) * 8                    # token dim padded to sublane multiple
    Kp = C * P * P
    Kpad = pp["Kpad"]

    # Non-overlapping im2col (layout glue); contraction dim zero-padded for full
    # MXU passes.  Equivalent to Conv2d(kernel=P, stride=P).
    patches = (x.reshape(B, C, gh, P, gw, P)
                 .transpose(0, 2, 4, 1, 3, 5)
                 .reshape(B, Np, Kp))
    patches = jnp.pad(patches, ((0, 0), (0, 0), (0, Kpad - Kp))).astype(jnp.bfloat16)

    # Patch embed + pos-embed + CLS token + row padding, fused, gridded over batch.
    xseq = embed_tokens(patches, pp["patch_w"], pp["patch_b"],
                        pp["pos_patch"], pp["cls_pos"], Npad)             # (B, Npad, D)

    # Whole transformer stack in one pallas_call (activation resident in VMEM).
    xseq = transformer_stack(xseq, pp["blocks"], num_heads=nh,
                             n_valid=N, depth=depth)

    # Final LayerNorm is per-token, so applying it only to the CLS row inside the
    # head kernel is identical to norm-then-select.  Head lanes padded to 128
    # (unmasked stores), sliced back to num_classes afterwards.
    cls_feat = xseq[:, 0, :]                                              # (B, D)
    logits = classifier_head(cls_feat, pp["norm_g"], pp["norm_b"],
                             pp["head_w"], pp["head_b"])
    return logits[:, :nc]


if __name__ == "__main__":
    cfg = dict(img_size=28, patch=14, in_chans=3, dim=384, depth=2,
               num_heads=6, mlp_ratio=4, num_classes=10)

    root = jax.random.PRNGKey(0)
    k_x, k_p = jax.random.split(root)

    # small NCHW image batch consistent with the module's conv patch embed (patch=14)
    x = jax.random.normal(k_x, (2, cfg["in_chans"], cfg["img_size"], cfg["img_size"]),
                          dtype=jnp.float32)
    params = init_params(k_p, **cfg)
    prepped = prepare_params(params, cfg)     # one-time weight prep (not per forward)

    logits = dinov2_classifier_forward(x, prepped, cfg)
    logits = jax.block_until_ready(logits)
    assert logits.shape == (2, cfg["num_classes"])
    assert bool(jnp.all(jnp.isfinite(logits)))
    print("KERNEL_OK")
</pallas_src>

<mosaic_0001>
module attributes {stable_mosaic.version = 11 : i64} {
  func.func @_embed_kernel(%arg0: i32, %arg1: memref<1x4x768xbf16, #tpu.memory_space<vmem>>, %arg2: memref<768x384xbf16, #tpu.memory_space<vmem>>, %arg3: memref<1x384xf32, #tpu.memory_space<vmem>>, %arg4: memref<4x384xf32, #tpu.memory_space<vmem>>, %arg5: memref<1x384xf32, #tpu.memory_space<vmem>>, %arg6: memref<1x8x384xf32, #tpu.memory_space<vmem>>) attributes {dimension_semantics = [#tpu.dimension_semantics<parallel>], iteration_bounds = array<i64: 2>, scalar_prefetch = 0 : i64, scratch_operands = 0 : i64, tpu.core_type = #tpu.core_type<tc>, window_params = [{transform_indices = @transform_0, window_bounds = array<i64: 1, 4, 768>}, {pipeline_mode = #tpu.pipeline_mode<synchronous>, transform_indices = @transform_1, window_bounds = array<i64: 768, 384>}, {pipeline_mode = #tpu.pipeline_mode<synchronous>, transform_indices = @transform_2, window_bounds = array<i64: 1, 384>}, {pipeline_mode = #tpu.pipeline_mode<synchronous>, transform_indices = @transform_3, window_bounds = array<i64: 4, 384>}, {pipeline_mode = #tpu.pipeline_mode<synchronous>, transform_indices = @transform_4, window_bounds = array<i64: 1, 384>}, {transform_indices = @transform_5, window_bounds = array<i64: 1, 8, 384>}]} {
    %c0 = arith.constant 0 : index
    %c0_0 = arith.constant 0 : index
    %c0_1 = arith.constant 0 : index
    %0 = vector.load %arg1[%c0, %c0_0, %c0_1] : memref<1x4x768xbf16, #tpu.memory_space<vmem>>, vector<1x4x768xbf16>
    %1 = vector.shape_cast %0 : vector<1x4x768xbf16> to vector<4x768xbf16>
    %c0_2 = arith.constant 0 : index
    %c0_3 = arith.constant 0 : index
    %2 = vector.load %arg2[%c0_2, %c0_3] : memref<768x384xbf16, #tpu.memory_space<vmem>>, vector<768x384xbf16>
    %cst = arith.constant dense<0.000000e+00> : vector<4x384xf32>
    %3 = tpu.matmul %1, %2, %cst {dimension_numbers = #tpu.dot_dimension_numbers<[1], [0], [0], [1], [0, 0, 1, 1], [], []>} : vector<4x768xbf16>, vector<768x384xbf16>, vector<4x384xf32> -> vector<4x384xf32>
    %cst_4 = arith.constant 0.000000e+00 : f32
    %4 = vector.broadcast %cst_4 : f32 to vector<8x384xf32>
    %c0_5 = arith.constant 0 : index
    %c0_6 = arith.constant 0 : index
    %c0_7 = arith.constant 0 : index
    %5 = vector.load %arg6[%c0_5, %c0_6, %c0_7] : memref<1x8x384xf32, #tpu.memory_space<vmem>>, vector<1x8x384xf32>
    %6 = vector.shape_cast %5 : vector<1x8x384xf32> to vector<8x384xf32>
    %7 = vector.shape_cast %4 : vector<8x384xf32> to vector<1x8x384xf32>
    tpu.vector_store %arg6[%c0_5, %c0_6, %c0_7], %7 {strides = array<i32>} : memref<1x8x384xf32, #tpu.memory_space<vmem>>, vector<1x8x384xf32>,
    %c0_8 = arith.constant 0 : index
    %c0_9 = arith.constant 0 : index
    %8 = vector.load %arg5[%c0_8, %c0_9] : memref<1x384xf32, #tpu.memory_space<vmem>>, vector<1x384xf32>
    %c0_10 = arith.constant 0 : index
    %c0_11 = arith.constant 0 : index
    %c0_12 = arith.constant 0 : index
    %9 = vector.load %arg6[%c0_10, %c0_11, %c0_12] : memref<1x8x384xf32, #tpu.memory_space<vmem>>, vector<1x1x384xf32>
    %10 = vector.shape_cast %9 : vector<1x1x384xf32> to vector<1x384xf32>
    %11 = vector.shape_cast %8 : vector<1x384xf32> to vector<1x1x384xf32>
    tpu.vector_store %arg6[%c0_10, %c0_11, %c0_12], %11 {strides = array<i32>} : memref<1x8x384xf32, #tpu.memory_space<vmem>>, vector<1x1x384xf32>,
    %c0_13 = arith.constant 0 : index
    %c0_14 = arith.constant 0 : index
    %12 = vector.load %arg3[%c0_13, %c0_14] : memref<1x384xf32, #tpu.memory_space<vmem>>, vector<1x384xf32>
    %13 = vector.broadcast %12 : vector<1x384xf32> to vector<4x384xf32>
    %14 = arith.addf %3, %13 : vector<4x384xf32>
    %c0_15 = arith.constant 0 : index
    %c0_16 = arith.constant 0 : index
    %15 = vector.load %arg4[%c0_15, %c0_16] : memref<4x384xf32, #tpu.memory_space<vmem>>, vector<4x384xf32>
    %16 = arith.addf %14, %15 : vector<4x384xf32>
    %c0_17 = arith.constant 0 : index
    %c1 = arith.constant 1 : index
    %c0_18 = arith.constant 0 : index
    %17 = vector.load %arg6[%c0_17, %c1, %c0_18] : memref<1x8x384xf32, #tpu.memory_space<vmem>>, vector<1x4x384xf32>
    %18 = vector.shape_cast %17 : vector<1x4x384xf32> to vector<4x384xf32>
    %19 = vector.shape_cast %16 : vector<4x384xf32> to vector<1x4x384xf32>
    tpu.vector_store %arg6[%c0_17, %c1, %c0_18], %19 {strides = array<i32>} : memref<1x8x384xf32, #tpu.memory_space<vmem>>, vector<1x4x384xf32>,
    return
  }
  func.func @transform_0(%arg0: i32) -> (i32, i32, i32) {
    %c0_i32 = arith.constant 0 : i32
    %c0_i32_0 = arith.constant 0 : i32
    %c0_i32_1 = arith.constant 0 : i32
    return %arg0, %c0_i32, %c0_i32_0 : i32, i32, i32
  }
  func.func @transform_1(%arg0: i32) -> (i32, i32) {
    %c0_i32 = arith.constant 0 : i32
    %c0_i32_0 = arith.constant 0 : i32
    %c0_i32_1 = arith.constant 0 : i32
    return %c0_i32, %c0_i32_0 : i32, i32
  }
  func.func @transform_2(%arg0: i32) -> (i32, i32) {
    %c0_i32 = arith.constant 0 : i32
    %c0_i32_0 = arith.constant 0 : i32
    %c0_i32_1 = arith.constant 0 : i32
    return %c0_i32, %c0_i32_0 : i32, i32
  }
  func.func @transform_3(%arg0: i32) -> (i32, i32) {
    %c0_i32 = arith.constant 0 : i32
    %c0_i32_0 = arith.constant 0 : i32
    %c0_i32_1 = arith.constant 0 : i32
    return %c0_i32, %c0_i32_0 : i32, i32
  }
  func.func @transform_4(%arg0: i32) -> (i32, i32) {
    %c0_i32 = arith.constant 0 : i32
    %c0_i32_0 = arith.constant 0 : i32
    %c0_i32_1 = arith.constant 0 : i32
    return %c0_i32, %c0_i32_0 : i32, i32
  }
  func.func @transform_5(%arg0: i32) -> (i32, i32, i32) {
    %c0_i32 = arith.constant 0 : i32
    %c0_i32_0 = arith.constant 0 : i32
    %c0_i32_1 = arith.constant 0 : i32
    return %arg0, %c0_i32, %c0_i32_0 : i32, i32, i32
  }
}

</mosaic_0001>

<bundles_post_ra>
// kernel: tpu_custom_call.1
= control target key start
LH: loop header
LB: loop body
LE: loop exit
PB: predicated region body
PF: predicated region fallthrough
CT: control target
= control target key end

     0   :  { %10 = vsyncpa [#allocation3], 0  ;;  %s2559_s0 = inlined_call_operand.hbm [shape: bf16[2,4,768], index: 0, kind: input, shape index: {}]   ;;  %s2560_s1 = inlined_call_operand.hbm [shape: bf16[768,384], index: 1, kind: input, shape index: {}]   ;;  %s2561_s2 = inlined_call_operand.vmem [shape: f32[1,384], index: 2, kind: input, shape index: {}]   ;;  %s2562_s3 = inlined_call_operand.hbm [shape: f32[4,384], index: 3, kind: input, shape index: {}]   ;;  %s2563_s4 = inlined_call_operand.vmem [shape: f32[1,384], index: 4, kind: input, shape index: {}]   ;;  %s2564_s5 = inlined_call_operand.hbm [shape: f32[2,8,384], index: 5, kind: output, shape index: {}]  }
   0x1   :  { %12 = vsyncpa [#allocation3 + $0x1], 0 }
   0x2   :  { %13 = vsyncpa [#allocation6], 0 }
   0x3   :  { %14 = vsyncpa [#allocation4], 0 }
   0x4   :  { %16 = vsyncpa [#allocation4 + $0x1], 0  ;;  %s2339_s18 = smov 0   ;;  %s2341_s19 = smov 0  }
   0x5   :  { %s2343_s20 = smov 0   ;;  %s2345_s21 = smov 0  }
   0x6 LB: > { %s2360_s22 = sadd.s32 4294967295, %s2299_s21   ;;  %s1658_s23 = sadd.s32 4294967294, %s2299_s21   ;;  %s2299_s21 = sphi %s2345_s21, %s2586_s21   ;;  %s2295_s20 = sphi %s2343_s20, %s2585_s20   ;;  %s2291_s19 = sphi %s2341_s19, %s2584_s19   ;;  %s2287_s18 = sphi %s2339_s18, %s2583_s18  }
   0x7   : > { %p42_p0 = scmp.ne.s32.totalorder %s2291_s19, %s2287_s18  ;;  %p2565_p1 = scmp.eq.s32.totalorder %s2360_s22, 0 }
   0x8   : > { %p156_p3 = scmp.eq.s32.totalorder %s1658_s23, 1  ;;  %p1659_p5 = scmp.ge.s32.totalorder %s2299_s21, 1 }
   0x9   : > { %p2369_p4 = por %p2565_p1, %p42_p0  ;;  %p163_p7 = scmp.lt.s32.totalorder %s2299_s21, 3 }
   0xa   : > { %p2374_p6 = por %p156_p3, %p42_p0  ;;  %s2301_s27 = smov [#allocation5]  }
   0xb   : > { %s2569_s24 = scalar_select %p2369_p4, 1, 0 }
   0xc   : > { %s2570_s25 = scalar_select %p2374_p6, 1, 0 }
   0xd   : > { %p2379_p8 = pnand %p1659_p5, %p163_p7  ;;  %s175_s28 = sshll.u32 %s2301_s27, 4  ;;  %s176_s28 = int_to_ptr.vmem [resolvable:$true] %s175_s28 }
   0xe   : > { %s2302_s30 = smov [#allocation7]   ;;  %s2162_s7 = scalar_lea.vmem %s176_s28, 18432 }
   0xf   : > { %s2571_s26 = scalar_select %p2379_p8, 1, 0 }
  0x10   : > { %p1898_p9 = pneg %p2379_p8  ;;  %s192_s6 = sshll.u32 %s2302_s30, 4  ;;  %s193_s6 = int_to_ptr.vmem [resolvable:$true] %s192_s6 }
  0x11   : > { %p2163_p13 = scmp.ne.s32.totalorder %s176_s28, %s2162_s7  ;;  %p2170_p5 = scmp.lt.s32.totalorder %s176_s28, %s176_s28 }
  0x12   : > { %p2388_p11 = pnand %p1898_p9, %p2565_p1  ;;  %p2171_p7 = scmp.lt.s32.totalorder %s2162_s7, %s2162_s7 }
  0x14   : > { %p2153_p12 = pneg %p2388_p11  ;;  %p2172_p10 = por %p2171_p7, %p2170_p5 }
  0x16   : > { %p2165_p0 = pnand %p2163_p13, %p2153_p12 }
  0x18   : > { %p2166_p3 = pneg %p2165_p0 }
  0x1a   : > { %p2173_p9 = pnand %p2172_p10, %p2166_p3 }
  0x1c   : > { %2176 = shalt.err (!%p2173_p9)
}
  0x1d   : > { %s2303_s8 = smov 192   ;;  %s2304_s9 = smov 12  }
  0x1e   : > { %1901 = dma.hbm_to_vmem [thread:$0]  (!%p2388_p11), %s2560_s1, 18432, %s176_s28, [#allocation6], %s2303_s8, %s2303_s8, %s2304_s9  }
  0x1f   : > { %s2188_s12 = scalar_lea.vmem %s193_s6, 192  ;;  %p2196_p2 = scmp.lt.s32.totalorder %s193_s6, %s193_s6 }
  0x20   : > { %p2189_p1 = scmp.ne.s32.totalorder %s193_s6, %s2188_s12  ;;  %p2197_p6 = scmp.lt.s32.totalorder %s2188_s12, %s2188_s12 }
  0x22   : > { %p2191_p13 = pnand %p2189_p1, %p2153_p12  ;;  %p2198_p5 = por %p2197_p6, %p2196_p2 }
  0x24   : > { %p2192_p0 = pneg %p2191_p13 }
  0x26   : > { %p2199_p10 = pnand %p2198_p5, %p2192_p0 }
  0x28   : > { %2202 = shalt.err (!%p2199_p10)
}
  0x29   : > { %1904 = dma.hbm_to_vmem [thread:$0]  (!%p2388_p11), %s2562_s3, 192, %s193_s6, [#allocation6]  }
  0x2a   : > { %s2411_s15 = sadd.s32 1, %s2299_s21   ;;  %s29_s16 = sadd.s32 1, %s2295_s20 }
  0x2b   : > { %s26_s17 = ssub.s32 %s2299_s21, %s2411_s15  ;;  %p36_p1 = scmp.ne.s32.totalorder %s2295_s20, %s2291_s19 }
  0x2c   : > { %p27_p2 = scmp.eq.s32.totalorder %s26_s17, 0  ;;  %p37_p6 = scmp.eq.s32.totalorder %s2299_s21, 0 }
  0x2d   : > { %p2573_p12 = scmp.eq.s32.totalorder %s2360_s22, 1  ;;  %p1915_p7 = scmp.lt.s32.totalorder %s2299_s21, 2 }
  0x2e   : > { %s2427_s27 = scalar_select %p27_p2, %s2295_s20, %s29_s16  }
  0x2f   : > { %p2421_p3 = por %p2573_p12, %p36_p1  ;;  %p38_p9 = por %p37_p6, %p36_p1 }
  0x30   : > { %s206_s28 = sand.u32 1, %s2295_s20   ;;  %s1882_s30 = smul.u32 192, %s2299_s21 }
  0x31   : > { %s2574_s23 = scalar_select %p2421_p3, 1, 0 }
  0x32   : > { %s1881_s29 = smul.u32 12, %s206_s28  ;;  %p2431_p11 = pnand %p1915_p7, %p38_p9 }
  0x33   : > { %s2438_s9 = scalar_lea.hbm %s2559_s0, %s1882_s30  ;;  %s207_s12 = scalar_lea.sflag [#allocation3], %s206_s28 }
  0x34   : > { %s210_s10 = scalar_lea.vmem [#allocation2], %s1881_s29  ;;  %s2203_s13 = scalar_lea.hbm %s2438_s9, 192 }
  0x35   : > { %s218_s11 = sshll.u32 %s210_s10, 4  ;;  %p2204_p13 = scmp.ne.s32.totalorder %s2438_s9, %s2203_s13  ;;  %s219_s11 = int_to_ptr.vmem [resolvable:$true] %s218_s11 }
  0x36   : > { %p2205_p0 = pneg %p2431_p11  ;;  %s2208_s17 = scalar_lea.hbm %s2559_s0, 384 }
  0x37   : > { %p2209_p1 = scmp.lt.s32.totalorder %s2438_s9, %s2559_s0  ;;  %p2210_p2 = scmp.lt.s32.totalorder %s2208_s17, %s2203_s13 }
  0x38   : > { %p2206_p5 = pnand %p2205_p0, %p2204_p13 }
  0x39   : > { %p2211_p6 = por %p2210_p2, %p2209_p1 }
  0x3a   : > { %p2207_p10 = pneg %p2206_p5 }
  0x3c   : > { %p2212_p12 = pnand %p2211_p6, %p2207_p10 }
  0x3e   : > { %2215 = shalt.err (!%p2212_p12)
}
  0x3f   : > { %s2216_s29 = scalar_lea.vmem %s219_s11, 192  ;;  %s2305_s28 = smov [#allocation2]  }
  0x40   : > { %p2217_p7 = scmp.ne.s32.totalorder %s219_s11, %s2216_s29  ;;  %s2221_s8 = sshll.u32 %s2305_s28, 4  ;;  %s2222_s8 = int_to_ptr.vmem [resolvable:$false] %s2221_s8 }
  0x41   : > { %s2223_s10 = scalar_lea.vmem %s2222_s8, 384  ;;  %p2224_p13 = scmp.lt.s32.totalorder %s219_s11, %s2222_s8 }
  0x42   : > { %p2219_p9 = pnand %p2217_p7, %p2205_p0  ;;  %p2225_p5 = scmp.lt.s32.totalorder %s2223_s10, %s2216_s29 }
  0x44   : > { %p2220_p3 = pneg %p2219_p9  ;;  %p2226_p4 = por %p2225_p5, %p2224_p13 }
  0x46   : > { %p2227_p8 = pnand %p2226_p4, %p2220_p3 }
  0x48   : > { %2230 = shalt.err (!%p2227_p8)
}
  0x49   : > { %1908 = dma.hbm_to_vmem [thread:$0]  (!%p2431_p11), %s2438_s9, 192, %s219_s11, %s207_s12  }
  0x4a   : > { %p2576_p10 = scmp.ne.s32.totalorder %s2571_s26, 0 }
  0x4b   : > { %s2457_s13 = sand.u32 (!%p2576_p10), 1, %s2291_s19   ;;  %p2577_p0 = scmp.ne.s32.totalorder (!%p2576_p10), %s2569_s24, 0 }
  0x4c   : > { %227 = sbr.rel (%p2576_p10) target bundleno = 462 (0x1ce), region = 40  ;;  %s230_s16 = scalar_lea.sflag (!%p2576_p10), [#allocation3], %s2457_s13 }
  0x4d   : > { %s1883_s14 = smul.u32 (!%p2576_p10), 12, %s2457_s13 }
  0x4f   : > { %s2461_s17 = scalar_lea.vmem (!%p2576_p10), [#allocation2], %s1883_s14 }
  0x51   : > { %2274 = dma.done.wait (%p2577_p0), %s230_s16, 192  }
  0x52   : > { %2276 = vsyncadd (%p2577_p0), %s230_s16, 4294967104  ;;  %p2578_p4 = scmp.eq.s32.totalorder %s2360_s22, 0 }
  0x54   : > { %2278 = dma.done.wait (%p2578_p4), [#allocation6], 18624   ;;  %p2579_p8 = pmov %p2578_p4 }
  0x55   : > { %v1957_v0 = vld [vmem:[#allocation5 + $0xac] ss:$12 sps:$4 sm:$0xff]   ;;  %v1961_v2 = vld [vmem:[#allocation5 + $0xa8] ss:$12 sps:$4 sm:$0xff]   ;;  %v1967_v6 = vld [vmem:[#allocation5 + $0x90] ss:$12 sps:$4 sm:$0xff]   ;;  %v467_v36 = vlaneseq }
  0x56   : > { %2280 = vsyncadd (%p2579_p8), [#allocation6], 4294948672  ;;  %v1959_v1 = vld [vmem:[#allocation5 + $0x22c] ss:$12 sps:$4 sm:$0xff]   ;;  %1291 = vmatprep.subr.bf16.mxu0 %v1957_v0  ;;  %v1962_v3 = vld [vmem:[#allocation5 + $0x228] ss:$12 sps:$4 sm:$0xff]  }
  0x57   : > { %1332 = vmatprep.subr.bf16.mxu1 %v1959_v1  ;;  %v1963_v4 = vld [vmem:[#allocation5 + $0x94] ss:$12 sps:$4 sm:$0xff]   ;;  %1292 = vmatpush1.bf16.msra.mxu0 %v1961_v2  ;;  %v1968_v7 = vld [vmem:[#allocation5 + $0x210] ss:$12 sps:$4 sm:$0xff]   ;;  %v1973_v10 = vld [vmem:[#allocation5 + $0x78] ss:$12 sps:$4 sm:$0xff]  }
  0x58   : > { %1333 = vmatpush1.bf16.msra.mxu1 %v1962_v3  ;;  %v1965_v5 = vld [vmem:[#allocation5 + $0x214] ss:$12 sps:$4 sm:$0xff]   ;;  %1293 = vmatprep.subr.bf16.mxu0 %v1963_v4  ;;  %v1969_v8 = vld [vmem:[#allocation5 + $0x7c] ss:$12 sps:$4 sm:$0xff]   ;;  %v1974_v11 = vld [vmem:[#allocation5 + $0x1f8] ss:$12 sps:$4 sm:$0xff]  }
  0x59   : > { %1334 = vmatprep.subr.bf16.mxu1 %v1965_v5  ;;  %v1971_v9 = vld [vmem:[#allocation5 + $0x1fc] ss:$12 sps:$4 sm:$0xff]   ;;  %v1975_v12 = vld [vmem:[#allocation5 + $0x64] ss:$12 sps:$4 sm:$0xff]   ;;  %v1979_v14 = vld [vmem:[#allocation5 + $0x60] ss:$12 sps:$4 sm:$0xff]  }
  0x5a   : > { %v1977_v13 = vld [vmem:[#allocation5 + $0x1e4] ss:$12 sps:$4 sm:$0xff]   ;;  %v1980_v15 = vld [vmem:[#allocation5 + $0x1e0] ss:$12 sps:$4 sm:$0xff]   ;;  %v1985_v18 = vld [vmem:[#allocation5 + $0x48] ss:$12 sps:$4 sm:$0xff]  }
  0x5b   : > { %1294 = vmatpush1.bf16.msra.mxu0 %v1967_v6  ;;  %v1981_v16 = vld [vmem:[#allocation5 + $0x4c] ss:$12 sps:$4 sm:$0xff]   ;;  %v1986_v19 = vld [vmem:[#allocation5 + $0x1c8] ss:$12 sps:$4 sm:$0xff]   ;;  %v1991_v22 = vld [vmem:[#allocation5 + $0x30] ss:$12 sps:$4 sm:$0xff]  }
  0x5c   : > { %1335 = vmatpush1.bf16.msra.mxu1 %v1968_v7  ;;  %1295 = vmatprep.subr.bf16.mxu0 %v1969_v8  ;;  %v1983_v17 = vld [vmem:[#allocation5 + $0x1cc] ss:$12 sps:$4 sm:$0xff]   ;;  %v1987_v20 = vld [vmem:[#allocation5 + $0x34] ss:$12 sps:$4 sm:$0xff]   ;;  %v1992_v23 = vld [vmem:[#allocation5 + $0x1b0] ss:$12 sps:$4 sm:$0xff]  }
  0x5d   : > { %1336 = vmatprep.subr.bf16.mxu1 %v1971_v9  ;;  %v1989_v21 = vld [vmem:[#allocation5 + $0x1b4] ss:$12 sps:$4 sm:$0xff]   ;;  %v1993_v24 = vld [vmem:[#allocation5 + $0x1c] ss:$12 sps:$4 sm:$0xff]   ;;  %v1997_v26 = vld [vmem:[#allocation5 + $0x18] ss:$12 sps:$4 sm:$0xff]  }
  0x5e   : > { %v1995_v25 = vld [vmem:[#allocation5 + $0x19c] ss:$12 sps:$4 sm:$0xff]   ;;  %v1998_v27 = vld [vmem:[#allocation5 + $0x198] ss:$12 sps:$4 sm:$0xff]   ;;  %v2003_v30 = vld [vmem:[#allocation5] ss:$12 sps:$4 sm:$0xff]  }
  0x5f   : > { %1296 = vmatpush1.bf16.msra.mxu0 %v1973_v10  ;;  %v1999_v28 = vld [vmem:[#allocation5 + $0x4] ss:$12 sps:$4 sm:$0xff]   ;;  %v2004_v31 = vld [vmem:[#allocation5 + $0x180] ss:$12 sps:$4 sm:$0xff]   ;;  %v2009_v34 = vld [vmem:[#allocation5 + $0x168] ss:$12 sps:$4 sm:$0xff]  }
  0x60   : > { %1337 = vmatpush1.bf16.msra.mxu1 %v1974_v11  ;;  %1297 = vmatprep.subr.bf16.mxu0 %v1975_v12  ;;  %v2001_v29 = vld [vmem:[#allocation5 + $0x184] ss:$12 sps:$4 sm:$0xff]   ;;  %v2005_v32 = vld [vmem:[#allocation5 + $0x16c] ss:$12 sps:$4 sm:$0xff]   ;;  %v2010_v35 = vld [vmem:[#allocation5 + $0x2e8] ss:$12 sps:$4 sm:$0xff]  }
  0x61   : > { %1338 = vmatprep.subr.bf16.mxu1 %v1977_v13  ;;  %v2007_v33 = vld [vmem:[#allocation5 + $0x2ec] ss:$12 sps:$4 sm:$0xff]   ;;  %v2306_v37 = vmov 1983009808   ;;  %v2011_v39 = vld [vmem:[#allocation5 + $0x154] ss:$12 sps:$4 sm:$0xff]  }
  0x62   : > { %v494_v38 = vunpack.c.l.s4 %v2306_v37  ;;  %v2013_v40 = vld [vmem:[#allocation5 + $0x2d4] ss:$12 sps:$4 sm:$0xff]   ;;  %v2015_v41 = vld [vmem:[#allocation5 + $0x150] ss:$12 sps:$4 sm:$0xff]   ;;  %v2472_v42 = vshrl.u32 %v467_v36, 7  ;;  %s1884_s24 = smul.u32 24, %s2457_s13 }
  0x63   : > { %1298 = vmatpush1.bf16.msra.mxu0 %v1979_v14  ;;  %v2016_v44 = vld [vmem:[#allocation5 + $0x2d0] ss:$12 sps:$4 sm:$0xff]   ;;  %v2021_v47 = vld [vmem:[#allocation5 + $0x138] ss:$12 sps:$4 sm:$0xff]   ;;  %v2027_v52 = vld [vmem:[#allocation5 + $0x120] ss:$12 sps:$4 sm:$0xff]  }
  0x64   : > { %1339 = vmatpush1.bf16.msra.mxu1 %v1980_v15  ;;  %1299 = vmatprep.subr.bf16.mxu0 %v1981_v16  ;;  %v495_v43 = vunpack.c.0.s8 %v494_v38  ;;  %v2017_v45 = vld [vmem:[#allocation5 + $0x13c] ss:$12 sps:$4 sm:$0xff]   ;;  %v2022_v48 = vld [vmem:[#allocation5 + $0x2b8] ss:$12 sps:$4 sm:$0xff]   ;;  %v2028_v54 = vld [vmem:[#allocation5 + $0x2a0] ss:$12 sps:$4 sm:$0xff]  }
  0x65   : > { %1340 = vmatprep.subr.bf16.mxu1 %v1983_v17  ;;  %v2019_v46 = vld [vmem:[#allocation5 + $0x2bc] ss:$12 sps:$4 sm:$0xff]   ;;  %v2023_v50 = vld [vmem:[#allocation5 + $0x124] ss:$12 sps:$4 sm:$0xff]   ;;  %v2029_v57 = vld [vmem:[#allocation5 + $0x10c] ss:$12 sps:$4 sm:$0xff]  }
  0x66   : > { %v498_v49 = vsub.s32 %v495_v43, %v2472_v42  ;;  %v2025_v51 = vld [vmem:[#allocation5 + $0x2a4] ss:$12 sps:$4 sm:$0xff]   ;;  %v269_v53 = vld [vmem:[%s2461_s17] sm:$0xff]  ;;  %s2504_s26 = scalar_lea.vmem [#allocation8], %s1884_s24  ;;  %vm469_vm0 = vcmp.lt.s32.totalorder %v467_v36, 384  ;;  %s1885_s7 = smul.u32 384, %s2360_s22 }
  0x67   : > { %1300 = vmatpush1.bf16.msra.mxu0 %v1985_v18  ;;  %v492_v56 = vcombine.high %v269_v53, %v269_v53  ;;  %v2031_v58 = vld [vmem:[#allocation5 + $0x28c] ss:$12 sps:$4 sm:$0xff]   ;;  %v2033_v61 = vld [vmem:[#allocation5 + $0x108] ss:$12 sps:$4 sm:$0xff]   ;;  %v2039_v2 = vld [vmem:[#allocation5 + $0xf0] ss:$12 sps:$4 sm:$0xff]  }
  0x68   : > { %1341 = vmatpush1.bf16.msra.mxu1 %v1986_v19  ;;  %1301 = vmatprep.subr.bf16.mxu0 %v1987_v20  ;;  %v2476_v55 = vrot.slane %v269_v53, %v498_v49  ;;  %v2034_v62 = vld [vmem:[#allocation5 + $0x288] ss:$12 sps:$4 sm:$0xff]   ;;  %v2040_v3 = vld [vmem:[#allocation5 + $0x270] ss:$12 sps:$4 sm:$0xff]   ;;  %v2045_v6 = vld [vmem:[#allocation5 + $0xd8] ss:$12 sps:$4 sm:$0xff]   ;;  %s1567_s8 = scalar_lea.hbm %s2564_s5, %s1885_s7 }
  0x69   : > { %1342 = vmatprep.subr.bf16.mxu1 %v1989_v21  ;;  %v2480_v60 = vrot.slane %v492_v56, %v498_v49  ;;  %v2035_v0 = vld [vmem:[#allocation5 + $0xf4] ss:$12 sps:$4 sm:$0xff]   ;;  %v2041_v4 = vld [vmem:[#allocation5 + $0xdc] ss:$12 sps:$4 sm:$0xff]   ;;  %v2046_v7 = vld [vmem:[#allocation5 + $0x258] ss:$12 sps:$4 sm:$0xff]  }
  0x6a   : > { %v507_v59 = vcombine.high %v2476_v55, %v2476_v55  ;;  %v2037_v1 = vld [vmem:[#allocation5 + $0x274] ss:$12 sps:$4 sm:$0xff]   ;;  %v2043_v5 = vld [vmem:[#allocation5 + $0x25c] ss:$12 sps:$4 sm:$0xff]   ;;  %v2047_v8 = vld [vmem:[#allocation5 + $0xc4] ss:$12 sps:$4 sm:$0xff]  }
  0x6b   : > { %1302 = vmatpush1.bf16.msra.mxu0 %v1991_v22  ;;  %v2484_v63 = vcombine.high %v2480_v60, %v2480_v60  ;;  %v2049_v9 = vld [vmem:[#allocation5 + $0x244] ss:$12 sps:$4 sm:$0xff]   ;;  %v2051_v10 = vld [vmem:[#allocation5 + $0xc0] ss:$12 sps:$4 sm:$0xff]   ;;  %v2054_v14 = vld [vmem:[#allocation5 + $0x3a8] ss:$12 sps:$4 sm:$0xff]  }
  0x6c   : > { %1343 = vmatpush1.bf16.msra.mxu1 %v1992_v23  ;;  %1303 = vmatprep.subr.bf16.mxu0 %v1993_v24  ;;  %v2052_v11 = vld [vmem:[#allocation5 + $0x240] ss:$12 sps:$4 sm:$0xff]   ;;  %v2057_v13 = vld [vmem:[#allocation5 + $0x170] ss:$12 sps:$4 sm:$0xff]   ;;  %v2062_v17 = vld [vmem:[#allocation5 + $0x158] ss:$12 sps:$4 sm:$0xff]  }
  0x6d   : > { %1344 = vmatprep.subr.bf16.mxu1 %v1995_v25  ;;  %1323 = vmatprep.mubr.bf16.mxu0 %v507_v59  ;;  %v2056_v12 = vld [vmem:[#allocation5 + $0x3ac] ss:$12 sps:$4 sm:$0xff]   ;;  %v2058_v15 = vld [vmem:[#allocation5 + $0xb0] ss:$12 sps:$4 sm:$0xff]   ;;  %v2061_v16 = vld [vmem:[#allocation5 + $0x394] ss:$12 sps:$4 sm:$0xff]  }
  0x6e   : > { %1364 = vmatprep.mubr.bf16.mxu1 %v2484_v63  ;;  %v2059_v18 = vld [vmem:[#allocation5 + $0x390] ss:$12 sps:$4 sm:$0xff]   ;;  %v2063_v19 = vld [vmem:[#allocation5 + $0x98] ss:$12 sps:$4 sm:$0xff]   ;;  %v2067_v21 = vld [vmem:[#allocation5 + $0x140] ss:$12 sps:$4 sm:$0xff]  }
  0x6f   : > { %1304 = vmatpush1.bf16.msra.mxu0 %v1997_v26  ;;  %v2066_v20 = vld [vmem:[#allocation5 + $0x37c] ss:$12 sps:$4 sm:$0xff]   ;;  %v2064_v22 = vld [vmem:[#allocation5 + $0x378] ss:$12 sps:$4 sm:$0xff]   ;;  %v2068_v23 = vld [vmem:[#allocation5 + $0x80] ss:$12 sps:$4 sm:$0xff]  }
  0x70   : > { %1345 = vmatpush1.bf16.msra.mxu1 %v1998_v27  ;;  %1305 = vmatprep.subr.bf16.mxu0 %v1999_v28  ;;  %v2071_v24 = vld [vmem:[#allocation5 + $0x364] ss:$12 sps:$4 sm:$0xff]   ;;  %v2072_v25 = vld [vmem:[#allocation5 + $0x128] ss:$12 sps:$4 sm:$0xff]   ;;  %v2069_v26 = vld [vmem:[#allocation5 + $0x360] ss:$12 sps:$4 sm:$0xff]  }
  0x71   : > { %1346 = vmatprep.subr.bf16.mxu1 %v2001_v29  ;;  %v2073_v27 = vld [vmem:[#allocation5 + $0x68] ss:$12 sps:$4 sm:$0xff]   ;;  %v2076_v28 = vld [vmem:[#allocation5 + $0x34c] ss:$12 sps:$4 sm:$0xff]   ;;  %v2077_v29 = vld [vmem:[#allocation5 + $0x110] ss:$12 sps:$4 sm:$0xff]  }
  0x72   : > { %v2086_v37 = vld [vmem:[#allocation5 + $0x31c] ss:$12 sps:$4 sm:$0xff]   ;;  %v2087_v38 = vld [vmem:[#allocation5 + $0xe0] ss:$12 sps:$4 sm:$0xff]   ;;  %v2103_v56 = vld [vmem:[#allocation5 + $0x218] ss:$12 sps:$4 sm:$0xff]  }
  0x73   : > { %1306 = vmatpush1.bf16.msra.mxu0 %v2003_v30  ;;  %v2074_v30 = vld [vmem:[#allocation5 + $0x348] ss:$12 sps:$4 sm:$0xff]   ;;  %v2098_v49 = vld [vmem:[#allocation5 + $0x230] ss:$12 sps:$4 sm:$0xff]   ;;  %s1569_s30 = sshll.u32 %s2504_s26, 4  ;;  %s1555_s10 = scalar_lea.sflag [#allocation4], %s2457_s13  ;;  %s1570_s30 = int_to_ptr.vmem [resolvable:$true] %s1569_s30 }
  0x74   : > { %1347 = vmatpush1.bf16.msra.mxu1 %v2004_v31  ;;  %1307 = vmatprep.subr.bf16.mxu0 %v2005_v32  ;;  %v2078_v31 = vld [vmem:[#allocation5 + $0x50] ss:$12 sps:$4 sm:$0xff]   ;;  %v2081_v32 = vld [vmem:[#allocation5 + $0x334] ss:$12 sps:$4 sm:$0xff]   ;;  %v473_v36 = vld [vmem:[%s2561_s2] sm:$0x7] }
  0x75   : > { %1348 = vmatprep.subr.bf16.mxu1 %v2007_v33  ;;  %v2082_v33 = vld [vmem:[#allocation5 + $0xf8] ss:$12 sps:$4 sm:$0xff]   ;;  %v2092_v43 = vld [vmem:[#allocation5 + $0xc8] ss:$12 sps:$4 sm:$0xff]   ;;  %s2231_s14 = scalar_lea.vmem %s1570_s30, 384  ;;  %p2580_p11 = scmp.ne.s32.totalorder %s2574_s23, 0 }
  0x76   : > { %p2232_p3 = scmp.ne.s32.totalorder %s1570_s30, %s2231_s14  ;;  %s2308_s16 = smov [#allocation8]  }
  0x77   : > { %1308 = vmatpush2.bf16.msra.mxu0 %v2009_v34  ;;  %v2079_v34 = vld [vmem:[#allocation5 + $0x330] ss:$12 sps:$4 sm:$0xff]  }
  0x78   : > { %1349 = vmatpush2.bf16.msra.mxu1 %v2010_v35  ;;  %1309 = vmatprep.subr.bf16.mxu0 %v2011_v39  ;;  %v2083_v35 = vld [vmem:[#allocation5 + $0x38] ss:$12 sps:$4 sm:$0xff]   ;;  %p2233_p1 = pnand %p2232_p3, %p2580_p11 }
  0x79   : > { %1350 = vmatprep.subr.bf16.mxu1 %v2013_v40  ;;  %v2084_v39 = vld [vmem:[#allocation5 + $0x318] ss:$12 sps:$4 sm:$0xff]   ;;  %v2088_v40 = vld [vmem:[#allocation5 + $0x20] ss:$12 sps:$4 sm:$0xff]  }
  0x7a   : > { %p2234_p2 = pneg %p2233_p1 }
  0x7b   : > { %1310 = vmatpush2.bf16.msra.mxu0 %v2015_v41  ;;  %v2091_v41 = vld [vmem:[#allocation5 + $0x304] ss:$12 sps:$4 sm:$0xff]  }
  0x7c   : > { %1351 = vmatpush2.bf16.msra.mxu1 %v2016_v44  ;;  %1311 = vmatprep.subr.bf16.mxu0 %v2017_v45  ;;  %v2089_v44 = vld [vmem:[#allocation5 + $0x300] ss:$12 sps:$4 sm:$0xff]   ;;  %v2093_v45 = vld [vmem:[#allocation5 + $0x8] ss:$12 sps:$4 sm:$0xff]  }
  0x7d   : > { %1352 = vmatprep.subr.bf16.mxu1 %v2019_v46  ;;  %v2096_v46 = vld [vmem:[#allocation5 + $0x46c] ss:$12 sps:$4 sm:$0xff]  }
  0x7f   : > { %1312 = vmatpush2.bf16.msra.mxu0 %v2021_v47  ;;  %v2097_v47 = vld [vmem:[#allocation5 + $0x2f0] ss:$12 sps:$4 sm:$0xff]  }
  0x80   : > { %1353 = vmatpush2.bf16.msra.mxu1 %v2022_v48  ;;  %1313 = vmatprep.subr.bf16.mxu0 %v2023_v50  ;;  %v2094_v48 = vld [vmem:[#allocation5 + $0x468] ss:$12 sps:$4 sm:$0xff]  }
  0x81   : > { %1354 = vmatprep.subr.bf16.mxu1 %v2025_v51  ;;  %v2101_v50 = vld [vmem:[#allocation5 + $0x454] ss:$12 sps:$4 sm:$0xff]   ;;  %v2490_v51 = vld.sshfl [vmem:[%s2461_s17 + $0x8] sm:$0x33 pattern:$0x76325410] }
  0x82   : > { %v2494_v53 = vcombine.high %v2490_v51, %v2490_v51  ;;  %s2235_s17 = sshll.u32 %s2308_s16, 4  ;;  %s2236_s17 = int_to_ptr.vmem [resolvable:$false] %s2235_s17 }
  0x83   : > { %1314 = vmatpush2.bf16.msra.mxu0 %v2027_v52  ;;  %v2102_v52 = vld [vmem:[#allocation5 + $0x2d8] ss:$12 sps:$4 sm:$0xff]   ;;  %s2237_s22 = scalar_lea.vmem %s2236_s17, 768  ;;  %p2238_p6 = scmp.lt.s32.totalorder %s1570_s30, %s2236_s17 }
  0x84   : > { %1355 = vmatpush2.bf16.msra.mxu1 %v2028_v54  ;;  %1315 = vmatprep.subr.bf16.mxu0 %v2029_v57  ;;  %v2099_v54 = vld [vmem:[#allocation5 + $0x450] ss:$12 sps:$4 sm:$0xff]   ;;  %p2239_p12 = scmp.lt.s32.totalorder %s2237_s22, %s2231_s14 }
  0x85   : > { %1356 = vmatprep.subr.bf16.mxu1 %v2031_v58  ;;  %v2106_v57 = vld [vmem:[#allocation5 + $0x43c] ss:$12 sps:$4 sm:$0xff]   ;;  %v2107_v58 = vld [vmem:[#allocation5 + $0x2c0] ss:$12 sps:$4 sm:$0xff]  }
  0x86   : > { %p2240_p7 = por %p2239_p12, %p2238_p6 }
  0x87   : > { %1316 = vmatpush2.bf16.msra.mxu0 %v2033_v61  ;;  %v2108_v61 = vld [vmem:[#allocation5 + $0x200] ss:$12 sps:$4 sm:$0xff]  }
  0x88   : > { %1357 = vmatpush2.bf16.msra.mxu1 %v2034_v62  ;;  %1317 = vmatprep.subr.bf16.mxu0 %v2035_v0  ;;  %v2111_v62 = vld [vmem:[#allocation5 + $0x424] ss:$12 sps:$4 sm:$0xff]   ;;  %v2112_v0 = vld [vmem:[#allocation5 + $0x2a8] ss:$12 sps:$4 sm:$0xff]   ;;  %p2241_p9 = pnand %p2240_p7, %p2234_p2 }
  0x89   : > { %1358 = vmatprep.subr.bf16.mxu1 %v2037_v1  ;;  %v2113_v1 = vld [vmem:[#allocation5 + $0x1e8] ss:$12 sps:$4 sm:$0xff]  }
  0x8b   : > { %1318 = vmatpush2.bf16.msra.mxu0 %v2039_v2  ;;  %v2116_v2 = vld [vmem:[#allocation5 + $0x40c] ss:$12 sps:$4 sm:$0xff]  }
  0x8c   : > { %1359 = vmatpush2.bf16.msra.mxu1 %v2040_v3  ;;  %1319 = vmatprep.subr.bf16.mxu0 %v2041_v4  ;;  %v2117_v3 = vld [vmem:[#allocation5 + $0x290] ss:$12 sps:$4 sm:$0xff]   ;;  %v2114_v4 = vld [vmem:[#allocation5 + $0x408] ss:$12 sps:$4 sm:$0xff]  }
  0x8d   : > { %1360 = vmatprep.subr.bf16.mxu1 %v2043_v5  ;;  %v2118_v5 = vld [vmem:[#allocation5 + $0x1d0] ss:$12 sps:$4 sm:$0xff]  }
  0x8f   : > { %1320 = vmatpush2.bf16.msra.mxu0 %v2045_v6  ;;  %v2122_v6 = vld [vmem:[#allocation5 + $0x278] ss:$12 sps:$4 sm:$0xff]  }
  0x90   : > { %1361 = vmatpush2.bf16.msra.mxu1 %v2046_v7  ;;  %1321 = vmatprep.subr.bf16.mxu0 %v2047_v8  ;;  %v2119_v7 = vld [vmem:[#allocation5 + $0x3f0] ss:$12 sps:$4 sm:$0xff]   ;;  %v2123_v8 = vld [vmem:[#allocation5 + $0x1b8] ss:$12 sps:$4 sm:$0xff]  }
  0x91   : > { %1362 = vmatprep.subr.bf16.mxu1 %v2049_v9  ;;  %v2126_v9 = vld [vmem:[#allocation5 + $0x3dc] ss:$12 sps:$4 sm:$0xff]  }
  0x93   : > { %1322 = vmatpush2.bf16.msra.mxu0 %v2051_v10  ;;  %v2127_v10 = vld [vmem:[#allocation5 + $0x260] ss:$12 sps:$4 sm:$0xff]  }
  0x94   : > { %1363 = vmatpush2.bf16.msra.mxu1 %v2052_v11  ;;  %1373 = vmatprep.subr.bf16.mxu0 %v2056_v12  ;;  %v2124_v11 = vld [vmem:[#allocation5 + $0x3d8] ss:$12 sps:$4 sm:$0xff]   ;;  %v2128_v12 = vld [vmem:[#allocation5 + $0x1a0] ss:$12 sps:$4 sm:$0xff]  }
  0x95   : > { %1815 = vmatprep.subr.bf16.mxu1 %v2057_v13  ;;  %v2131_v13 = vld [vmem:[#allocation5 + $0x3c4] ss:$12 sps:$4 sm:$0xff]  }
  0x96   : > { %1324 = vmatmul.mubr.bf16.vlgmr.msra.gmra.mxu0 %v2476_v55 }
  0x97   : > { %1365 = vmatmul.mubr.bf16.vlgmr.msra.gmra.mxu1 %v2480_v60  ;;  %1374 = vmatpush1.bf16.msra.mxu0 %v2054_v14  ;;  %v2132_v14 = vld [vmem:[#allocation5 + $0x248] ss:$12 sps:$4 sm:$0xff]  }
  0x98   : > { %1816 = vmatpush3.bf16.msra.mxu1 %v2058_v15  ;;  %1375 = vmatprep.subr.bf16.mxu0 %v2061_v16  ;;  %v2129_v15 = vld [vmem:[#allocation5 + $0x3c0] ss:$12 sps:$4 sm:$0xff]   ;;  %v2133_v16 = vld [vmem:[#allocation5 + $0x188] ss:$12 sps:$4 sm:$0xff]  }
  0x99   : > { %1817 = vmatprep.subr.bf16.mxu1 %v2062_v17  ;;  %1446 = vmatprep.mubr.bf16.mxu1 %v507_v59  ;;  %v2104_v59 = vld [vmem:[#allocation5 + $0x438] ss:$12 sps:$4 sm:$0xff]   ;;  %v2134_v17 = vld [vmem:[#allocation5 + $0x470] ss:$12 sps:$4 sm:$0xff]  }
  0x9a   : > { %1405 = vmatprep.mubr.bf16.mxu0 %v2494_v53 }
  0x9b   : > { %1376 = vmatpush1.bf16.msra.mxu0 %v2059_v18  ;;  %v2135_v18 = vld [vmem:[#allocation5 + $0x3b0] ss:$12 sps:$4 sm:$0xff]  }
  0x9c   : > { %1818 = vmatpush3.bf16.msra.mxu1 %v2063_v19  ;;  %1377 = vmatprep.subr.bf16.mxu0 %v2066_v20  ;;  %v2136_v19 = vld [vmem:[#allocation5 + $0x458] ss:$12 sps:$4 sm:$0xff]  }
  0x9d   : > { %1819 = vmatprep.subr.bf16.mxu1 %v2067_v21  ;;  %v2137_v20 = vld [vmem:[#allocation5 + $0x398] ss:$12 sps:$4 sm:$0xff]   ;;  %v2138_v21 = vld [vmem:[#allocation5 + $0x440] ss:$12 sps:$4 sm:$0xff]  }
  0x9f   : > { %1378 = vmatpush1.bf16.msra.mxu0 %v2064_v22  ;;  %v2139_v22 = vld [vmem:[#allocation5 + $0x380] ss:$12 sps:$4 sm:$0xff]  }
  0xa0   : > { %1820 = vmatpush3.bf16.msra.mxu1 %v2068_v23  ;;  %1379 = vmatprep.subr.bf16.mxu0 %v2071_v24  ;;  %v2140_v23 = vld [vmem:[#allocation5 + $0x428] ss:$12 sps:$4 sm:$0xff]  }
  0xa1   : > { %1821 = vmatprep.subr.bf16.mxu1 %v2072_v25  ;;  %v2141_v24 = vld [vmem:[#allocation5 + $0x368] ss:$12 sps:$4 sm:$0xff]   ;;  %v2142_v25 = vld [vmem:[#allocation5 + $0x410] ss:$12 sps:$4 sm:$0xff]  }
  0xa3   : > { %1380 = vmatpush1.bf16.msra.mxu0 %v2069_v26  ;;  %v2143_v26 = vld [vmem:[#allocation5 + $0x350] ss:$12 sps:$4 sm:$0xff]  }
  0xa4   : > { %1822 = vmatpush3.bf16.msra.mxu1 %v2073_v27  ;;  %1381 = vmatprep.subr.bf16.mxu0 %v2076_v28  ;;  %v2144_v27 = vld [vmem:[#allocation5 + $0x3f8] ss:$12 sps:$4 sm:$0xff]   ;;  %v2146_v28 = vld [vmem:[#allocation5 + $0x3e0] ss:$12 sps:$4 sm:$0xff]  }
  0xa5   : > { %1823 = vmatprep.subr.bf16.mxu1 %v2077_v29  ;;  %v2147_v29 = vld [vmem:[#allocation5 + $0x320] ss:$12 sps:$4 sm:$0xff]  }
  0xa7   : > { %1382 = vmatpush1.bf16.msra.mxu0 %v2074_v30  ;;  %v2148_v30 = vld [vmem:[#allocation5 + $0x3c8] ss:$12 sps:$4 sm:$0xff]  }
  0xa8   : > { %1824 = vmatpush3.bf16.msra.mxu1 %v2078_v31  ;;  %1383 = vmatprep.subr.bf16.mxu0 %v2081_v32  ;;  %v2149_v31 = vld [vmem:[#allocation5 + $0x308] ss:$12 sps:$4 sm:$0xff]   ;;  %v2307_v32 = vmov 0.0  }
  0xa9   : > { %1825 = vmatprep.subr.bf16.mxu1 %v2082_v33  ;;  %463 = vst [vmem:[%s2504_s26] sm:$0xff] %v2307_v32  ;;  %464 = vst [vmem:[%s2504_s26 + $0x8] sm:$0xff] %v2307_v32  ;;  %v466_v33 = vld [vmem:[%s2563_s4] sm:$0x7] }
  0xaa   : > { %465 = vst [vmem:[%s2504_s26 + $0x10] sm:$0xff] %v2307_v32 }
  0xab   : > { %1384 = vmatpush1.bf16.msra.mxu0 %v2079_v34  ;;  %471 = vst.msk [vmem:[%s2504_s26] ss:$8 sm:$0x7] %vm469_vm0, %v466_v33 }
  0xac   : > { %1826 = vmatpush3.bf16.msra.mxu1 %v2083_v35  ;;  %1385 = vmatprep.subr.bf16.mxu0 %v2086_v37 }
  0xad   : > { %1827 = vmatprep.subr.bf16.mxu1 %v2087_v38 }
  0xaf   : > { %1386 = vmatpush1.bf16.msra.mxu0 %v2084_v39 }
  0xb0   : > { %1828 = vmatpush3.bf16.msra.mxu1 %v2088_v40  ;;  %1387 = vmatprep.subr.bf16.mxu0 %v2091_v41 }
  0xb1   : > { %1829 = vmatprep.subr.bf16.mxu1 %v2092_v43 }
  0xb3   : > { %1388 = vmatpush1.bf16.msra.mxu0 %v2089_v44 }
  0xb4   : > { %1830 = vmatpush3.bf16.msra.mxu1 %v2093_v45  ;;  %1389 = vmatprep.subr.bf16.mxu0 %v2096_v46 }
  0xb5   : > { %1837 = vmatprep.subr.bf16.mxu1 %v2097_v47 }
  0xb7   : > { %1447 = vmatmul.mubr.bf16.vlgmr.msra.gmra.mxu1 %v2476_v55  ;;  %1390 = vmatpush2.bf16.msra.mxu0 %v2094_v48  ;;  %v2109_v55 = vld [vmem:[#allocation5 + $0x420] ss:$12 sps:$4 sm:$0xff]   ;;  %v477_v48 = vsub.s32 0, %v2472_v42 }
  0xb8   : > { %1838 = vmatpush3.bf16.msra.mxu1 %v2098_v49  ;;  %1391 = vmatprep.subr.bf16.mxu0 %v2101_v50  ;;  %v481_v49 = vsub.s32 1, %v2472_v42 }
  0xb9   : > { %1839 = vmatprep.subr.bf16.mxu1 %v2102_v52  ;;  %1486 = vmatprep.mubr.bf16.mxu1 %v2484_v63  ;;  %v2121_v63 = vld [vmem:[#allocation5 + $0x3f4] ss:$12 sps:$4 sm:$0xff]   ;;  %v478_v50 = vrot.slane %v473_v36, %v477_v48 }
  0xbb   : > { %1392 = vmatpush2.bf16.msra.mxu0 %v2099_v54  ;;  %v1534_v54 = vld [vmem:[#allocation7] sm:$0xff] }
  0xbc   : > { %1840 = vmatpush3.bf16.msra.mxu1 %v2103_v56  ;;  %1393 = vmatprep.subr.bf16.mxu0 %v2106_v57 }
  0xbd   : > { %1841 = vmatprep.subr.bf16.mxu1 %v2107_v58 }
  0xbf   : > { %1394 = vmatpush2.bf16.msra.mxu0 %v2104_v59 }
  0xc0   : > { %1842 = vmatpush3.bf16.msra.mxu1 %v2108_v61  ;;  %1395 = vmatprep.subr.bf16.mxu0 %v2111_v62  ;;  %v1537_v62 = vcombine.high %v1534_v54, %v1534_v54 }
  0xc1   : > { %1843 = vmatprep.subr.bf16.mxu1 %v2112_v0 }
  0xc3   : > { %1396 = vmatpush2.bf16.msra.mxu0 %v2109_v55 }
  0xc4   : > { %1844 = vmatpush3.bf16.msra.mxu1 %v2113_v1  ;;  %1397 = vmatprep.subr.bf16.mxu0 %v2116_v2 }
  0xc5   : > { %1845 = vmatprep.subr.bf16.mxu1 %v2117_v3 }
  0xc7   : > { %1398 = vmatpush2.bf16.msra.mxu0 %v2114_v4 }
  0xc8   : > { %1846 = vmatpush3.bf16.msra.mxu1 %v2118_v5  ;;  %1399 = vmatprep.subr.bf16.mxu0 %v2121_v63 }
  0xc9   : > { %1847 = vmatprep.subr.bf16.mxu1 %v2122_v6 }
  0xcb   : > { %1400 = vmatpush2.bf16.msra.mxu0 %v2119_v7 }
  0xcc   : > { %1848 = vmatpush3.bf16.msra.mxu1 %v2123_v8  ;;  %1401 = vmatprep.subr.bf16.mxu0 %v2126_v9  ;;  %v485_v9 = vsub.s32 2, %v2472_v42 }
  0xcd   : > { %1849 = vmatprep.subr.bf16.mxu1 %v2127_v10 }
  0xce   : > { %v486_v10 = vrot.slane %v473_v36, %v485_v9 }
  0xcf   : > { %1402 = vmatpush2.bf16.msra.mxu0 %v2124_v11 }
  0xd0   : > { %1850 = vmatpush3.bf16.msra.mxu1 %v2128_v12  ;;  %1403 = vmatprep.subr.bf16.mxu0 %v2131_v13 }
  0xd1   : > { %1851 = vmatprep.subr.bf16.mxu1 %v2132_v14 }
  0xd3   : > { %1404 = vmatpush2.bf16.msra.mxu0 %v2129_v15 }
  0xd4   : > { %1852 = vmatpush3.bf16.msra.mxu1 %v2133_v16  ;;  %1859 = vmatprep.subr.bf16.mxu0 %v2134_v17 }
  0xd6   : > { %1406 = vmatmul.mubr.bf16.vlgmr.msra.gmra.mxu0 %v2490_v51 }
  0xd7   : > { %1487 = vmatmul.mubr.bf16.vlgmr.msra.gmra.mxu1 %v2480_v60  ;;  %1860 = vmatpush3.bf16.msra.mxu0 %v2135_v18  ;;  %v2145_v60 = vld [vmem:[#allocation5 + $0x338] ss:$12 sps:$4 sm:$0xff]   ;;  %v1535_v18 = vld [vmem:[#allocation7 + $0x8] sm:$0xf] }
  0xd8   : > { %1526 = vmatprep.mubr.bf16.mxu0 %v2494_v53  ;;  %1861 = vmatprep.subr.bf16.mxu0 %v2136_v19 }
  0xdb   : > { %1862 = vmatpush3.bf16.msra.mxu0 %v2137_v20 }
  0xdc   : > { %1863 = vmatprep.subr.bf16.mxu0 %v2138_v21 }
  0xdf   : > { %1864 = vmatpush3.bf16.msra.mxu0 %v2139_v22 }
  0xe0   : > { %1865 = vmatprep.subr.bf16.mxu0 %v2140_v23 }
  0xe3   : > { %1866 = vmatpush3.bf16.msra.mxu0 %v2141_v24 }
  0xe4   : > { %1867 = vmatprep.subr.bf16.mxu0 %v2142_v25 }
  0xe7   : > { %1868 = vmatpush3.bf16.msra.mxu0 %v2143_v26 }
  0xe8   : > { %1869 = vmatprep.subr.bf16.mxu0 %v2144_v27 }
  0xeb   : > { %1870 = vmatpush3.bf16.msra.mxu0 %v2145_v60 }
  0xec   : > { %1871 = vmatprep.subr.bf16.mxu0 %v2146_v28 }
  0xef   : > { %1872 = vmatpush3.bf16.msra.mxu0 %v2147_v29 }
  0xf0   : > { %1873 = vmatprep.subr.bf16.mxu0 %v2148_v30 }
  0xf3   : > { %1874 = vmatpush3.bf16.msra.mxu0 %v2149_v31 }
  0xf6   : > { %1527 = vmatmul.mubr.bf16.vlgmr.msra.gmra.mxu0 %v2490_v51  ;;  %v482_v51 = vrot.slane %v473_v36, %v481_v49 }
 0x156   : > { %v1325_v34 = vpop.f32.mrf.mxu0 }
 0x157   : > { %v1366_v35 = vpop.f32.mrf.mxu1  ;;  %v1326_v52 = vadd.f32 %v1325_v34, %v478_v50 }
 0x158   : > { %v1327_v37 = vpop.f32.mrf.mxu0 }
 0x159   : > { %v1368_v38 = vpop.f32.mrf.mxu1  ;;  %v1328_v53 = vadd.f32 %v1327_v37, %v482_v51  ;;  %v1367_v56 = vadd.f32 %v1366_v35, %v1326_v52 }
 0x15a   : > { %v1329_v39 = vpop.f32.mrf.mxu0 }
 0x15b   : > { %v1370_v40 = vpop.f32.mrf.mxu1  ;;  %v1369_v59 = vadd.f32 %v1368_v38, %v1328_v53 }
 0x15c   : > { %v1330_v41 = vpop.f32.mrf.mxu0 }
 0x15d   : > { %v1371_v43 = vpop.f32.mrf.mxu1 }
 0x177   : > { %v1831_v44 = vpop.f32.mrf.mxu1 }
 0x179   : > { %v1832_v45 = vpop.f32.mrf.mxu1 }
 0x17a   : > { %v1833_v11 = vadd.f32 %v1832_v45, %v1831_v44 }
 0x17b   : > { %v1834_v46 = vpop.f32.mrf.mxu1 }
 0x17c   : > { %v1449_v12 = vadd.f32 %v1833_v11, %v486_v10 }
 0x17d   : > { %v1835_v47 = vpop.f32.mrf.mxu1 }
 0x196   : > { %v1407_v57 = vpop.f32.mrf.mxu0 }
 0x197   : > { %v1853_v58 = vpop.f32.mrf.mxu1  ;;  %v1408_v61 = vadd.f32 %v1407_v57, %v1367_v56 }
 0x198   : > { %v1409_v0 = vpop.f32.mrf.mxu0 }
 0x199   : > { %v1854_v55 = vpop.f32.mrf.mxu1  ;;  %v1539_v1 = vadd.f32 %v1534_v54, %v1408_v61  ;;  %v1410_v2 = vadd.f32 %v1409_v0, %v1369_v59 }
 0x19a   : > { %v1411_v3 = vpop.f32.mrf.mxu0  ;;  %v1855_v13 = vadd.f32 %v1854_v55, %v1853_v58 }
 0x19b   : > { %v1856_v4 = vpop.f32.mrf.mxu1  ;;  %v1545_v5 = vrot.slane %v1539_v1, 7  ;;  %v1540_v63 = vadd.f32 %v1537_v62, %v1410_v2 }
 0x19c   : > { %v1412_v6 = vpop.f32.mrf.mxu0  ;;  %v1489_v16 = vadd.f32 %v1855_v13, %v1449_v12 }
 0x19d   : > { %v1857_v7 = vpop.f32.mrf.mxu1  ;;  %1551 = vst [vmem:[%s2504_s26] sm:$0x1e] %v1545_v5  ;;  %v1546_v8 = vrot.slane %v1540_v63, 7 }
 0x19f   : > { %1552 = vst [vmem:[%s2504_s26 + $0x8] sm:$0x1e] %v1546_v8 }
 0x1b6   : > { %v1875_v14 = vpop.f32.mrf.mxu0 }
 0x1b8   : > { %v1876_v15 = vpop.f32.mrf.mxu0 }
 0x1b9   : > { %v1877_v17 = vadd.f32 %v1876_v15, %v1875_v14 }
 0x1ba   : > { %v1878_v19 = vpop.f32.mrf.mxu0 }
 0x1bb   : > { %v1529_v20 = vadd.f32 %v1877_v17, %v1489_v16 }
 0x1bc   : > { %v1879_v21 = vpop.f32.mrf.mxu0 }
 0x1bd   : > { %v1541_v22 = vadd.f32 %v1535_v18, %v1529_v20 }
 0x1bf   : > { %v1547_v23 = vrot.slane %v1541_v22, 7 }
 0x1c1   : > { %1553 = vst [vmem:[%s2504_s26 + $0x10] sm:$0x1e] %v1547_v23 }
 0x1c2   : > { %2244 = shalt.err (!%p2241_p9)
}
 0x1c3   : > { %s2245_s24 = scalar_lea.hbm %s1567_s8, 384  ;;  %s2249_s6 = scalar_lea.hbm %s2564_s5, 768 }
 0x1c4   : > { %p2246_p13 = scmp.ne.s32.totalorder %s1567_s8, %s2245_s24  ;;  %p2250_p0 = scmp.lt.s32.totalorder %s1567_s8, %s2564_s5 }
 0x1c5   : > { %p2251_p4 = scmp.lt.s32.totalorder %s2249_s6, %s2245_s24 }
 0x1c6   : > { %p2247_p5 = pnand %p2246_p13, %p2580_p11 }
 0x1c7   : > { %p2252_p8 = por %p2251_p4, %p2250_p0 }
 0x1c8   : > { %p2248_p10 = pneg %p2247_p5 }
 0x1ca   : > { %p2253_p3 = pnand %p2252_p8, %p2248_p10 }
 0x1cc   : > { %2256 = shalt.err (!%p2253_p3)
}
 0x1cd   : > { %1896 = dma.vmem_to_hbm [thread:$0]  (%p2580_p11), %s1570_s30, 384, %s1567_s8, %s1555_s10  }
 0x1ce PF: > { %s1581_s12 = sand.u32 1, %s2287_s18   ;;  %p2581_p1 = scmp.ne.s32.totalorder %s2570_s25, 0 }
 0x1cf   : > { %p2582_p2 = scmp.ge.s32.totalorder %s2299_s21, 2  ;;  %s1582_s7 = scalar_lea.sflag [#allocation4], %s1581_s12 }
 0x1d1   : > { %p1910_p6 = pnand %p2582_p2, %p2581_p1 }
 0x1d3   : > { %p1911_p12 = pneg %p1910_p6 }
 0x1d5   : > { %2282 = dma.done.wait (%p1911_p12), %s1582_s7, 384  }
 0x1d6   : > { %2284 = vsyncadd (%p1911_p12), %s1582_s7, 4294966912  ;;  %p19_p7 = scmp.ge.s32.totalorder %s2411_s15, 4   ;;  %s2583_s18 = smov %s2291_s19 }
 0x1d7   : > { %s2584_s19 = smov %s2295_s20  ;;  %s2585_s20 = smov %s2427_s27 }
 0x1d8   : > { %s2586_s21 = smov %s2411_s15  ;;  %21 = sbr.rel (!%p19_p7) target bundleno = 6 (0x6), region = 93 }
 0x1dd   :  { %1587 = vsyncpa [#allocation3], 1 }
 0x1de   :  { %1589 = vsyncpa [#allocation3 + $0x1], 1 }
 0x1df   :  { %1590 = vsyncpa [#allocation6], 1 }
 0x1e0   :  { %1591 = vsyncpa [#allocation4], 1 }
 0x1e1   :  { %1593 = vsyncpa [#allocation4 + $0x1], 1 }

</bundles_post_ra>
